<compile_context>
chip_gen: v6e
topology: v6e:2x2x1
jax: 0.10.0
libtpu: 0.0.40
codegen_flags: <defaults>
</compile_context>

<pallas_src>
import jax
import jax.numpy as jnp
from jax.experimental import pallas as pl
from jax.experimental.pallas import tpu as pltpu

# ---- module hyper-parameters (consistent with the nn.Module ctor) ----
CONV_NUMBER = 4      # conv_number
NUM_DRIVERS = 3      # number_of_drivers
INPUT_SIZE  = 16     # input_size (ip)
QEST_SIZE   = 8      # qest_size (np)
HIDDEN_QEST = 4      # hidden_qest
HIDDEN_SIZE = 32     # hidden_size
N_HIDDEN    = 2      # n
OUTPUT_DIM  = 8      # output_dim
BATCH       = 2

K_ROWS   = NUM_DRIVERS + HIDDEN_QEST                 # 7  (conv kernel height)
FEAT_IN  = QEST_SIZE + NUM_DRIVERS * INPUT_SIZE      # 56 (flattened input features)
CONV_OUT = CONV_NUMBER * INPUT_SIZE                  # 64 (conv output features)

# ---- packed-slab layout (all offsets tile-aligned) ----
PAD          = 64                                    # uniform padded band width
DENSE_LAYERS = 1 + N_HIDDEN + 1                      # hidden1 + n hidden + head = 4
WB_ROWS      = DENSE_LAYERS * PAD                    # 256 rows, bf16 slab
BIAS_OFF     = FEAT_IN                               # 56 (multiple of 8) -> bias rows
CS_ROWS      = 64                                    # f32 slab rows (56 w + 5 bias + pad)
BATCH_TILE   = 128                                   # batch grid tile (multiple of 8)

assert CONV_OUT == PAD and HIDDEN_SIZE <= PAD and OUTPUT_DIM <= PAD
assert BIAS_OFF % 8 == 0 and BIAS_OFF + 1 + DENSE_LAYERS <= CS_ROWS


# -------------------------- Pallas kernel (hot path) --------------------------
def _forward_kernel(x_ref, wb_ref, cs_ref, o_ref):
    f32, bf16 = jnp.float32, jnp.bfloat16

    # Layer 0: fused (qest Linear ∘ conv-as-dense), f32 weights.  The kernel is
    # latency-bound, so the f32 matmul is free and avoids folding two layers'
    # rounding into one bf16 cast (review accuracy note).
    a = jnp.tanh(
        jnp.dot(x_ref[...], cs_ref[0:FEAT_IN, :], preferred_element_type=f32)
        + cs_ref[BIAS_OFF:BIAS_OFF + 1, :])                            # (B, 64) f32

    # Layers 1..4: hidden1, n hidden layers, output head.  Each weight is a
    # zero-padded (64, 64) bf16 band at a tile-aligned sublane offset, so every
    # slice is full-width and aligned (no lane rotates / masked loads on the
    # serial chain).  Zero padding stays exactly zero through bias+tanh, so the
    # extra lanes never pollute the real outputs.
    for i in range(DENSE_LAYERS):
        w = wb_ref[i * PAD:(i + 1) * PAD, :]                           # (64, 64) bf16
        b = cs_ref[BIAS_OFF + 1 + i:BIAS_OFF + 2 + i, :]               # (1, 64)  f32
        a = jnp.tanh(jnp.dot(a.astype(bf16), w, preferred_element_type=f32) + b)

    o_ref[...] = a[:, :OUTPUT_DIM].astype(o_ref.dtype)


# ------------------------------ parameter setup ------------------------------
def _linear_init(key, fan_in, fan_out):
    """PyTorch-style uniform(-1/sqrt(fan_in), 1/sqrt(fan_in)); weight stored (in, out)."""
    bound = 1.0 / float(fan_in) ** 0.5
    kw, kb = jax.random.split(key)
    w = jax.random.uniform(kw, (fan_in, fan_out), jnp.float32, -bound, bound)
    b = jax.random.uniform(kb, (1, fan_out), jnp.float32, -bound, bound)
    return w, b


def init_params(key):
    """f32 master parameters, matching the PyTorch module layout."""
    ks = jax.random.split(key, 5 + N_HIDDEN)
    # qest: Linear(qest_size -> hidden_qest * input_size)
    wq, bq = _linear_init(ks[0], QEST_SIZE, HIDDEN_QEST * INPUT_SIZE)
    # conv1: Conv2d(1, C, (K, 1)) -> weight (C, 1, K, 1) stored as (C, K)
    c_bound = 1.0 / float(K_ROWS) ** 0.5
    kcw, kcb = jax.random.split(ks[1])
    wc = jax.random.uniform(kcw, (CONV_NUMBER, K_ROWS), jnp.float32, -c_bound, c_bound)
    bc = jax.random.uniform(kcb, (CONV_NUMBER,), jnp.float32, -c_bound, c_bound)
    # hidden1: Linear(C*ip -> hidden)
    w1, b1 = _linear_init(ks[2], CONV_OUT, HIDDEN_SIZE)
    # hidden stack: n x Linear(hidden -> hidden)
    whs, bhs = [], []
    for i in range(N_HIDDEN):
        w, b = _linear_init(ks[3 + i], HIDDEN_SIZE, HIDDEN_SIZE)
        whs.append(w)
        bhs.append(b)
    wh = jnp.stack(whs)                      # (n, H, H)
    bh = jnp.stack(bhs)                      # (n, 1, H)
    # res: Linear(hidden -> output_dim)
    wr, br = _linear_init(ks[3 + N_HIDDEN], HIDDEN_SIZE, OUTPUT_DIM)
    return dict(wq=wq, bq=bq, wc=wc, bc=bc, w1=w1, b1=b1, wh=wh, bh=bh, wr=wr, br=br)


def prepare_params(params):
    """One-time construction of the fused / tile-aligned packed kernel operands.
    Hoisted out of forward(); the per-call HLO is essentially just the pallas_call."""
    f32, bf16 = jnp.float32, jnp.bfloat16

    # --- conv1 as a dense (K*ip, C*ip) matmul (channel-major output columns) ---
    eye = jnp.eye(INPUT_SIZE, dtype=f32)
    m4 = jnp.einsum('ck,ab->kacb', params['wc'], eye)             # (K, ip, C, ip)
    m = m4.reshape(K_ROWS * INPUT_SIZE, CONV_OUT)
    m_x = m[:NUM_DRIVERS * INPUT_SIZE]                            # driver rows
    m_p = m[NUM_DRIVERS * INPUT_SIZE:]                            # qest rows
    b_conv = jnp.repeat(params['bc'], INPUT_SIZE).reshape(1, CONV_OUT)

    # --- fold the (activation-free) qest Linear into the conv matmul ---
    # p @ m_p = x_q @ (wq @ m_p) + bq @ m_p;  xf = [x_q ; x_drivers]
    w_q_fused = params['wq'] @ m_p                                # (qest_size, C*ip)
    w_fused = jnp.concatenate([w_q_fused, m_x], axis=0)           # (FEAT_IN, C*ip)
    b_fused = params['bq'] @ m_p + b_conv                         # (1, C*ip)

    # --- f32 constants slab: fused first-layer weight + one 64-lane bias row/layer ---
    cs = jnp.zeros((CS_ROWS, PAD), f32)
    cs = cs.at[0:FEAT_IN, :].set(w_fused)
    cs = cs.at[BIAS_OFF, :].set(b_fused[0])
    cs = cs.at[BIAS_OFF + 1, 0:HIDDEN_SIZE].set(params['b1'][0])
    for i in range(N_HIDDEN):
        cs = cs.at[BIAS_OFF + 2 + i, 0:HIDDEN_SIZE].set(params['bh'][i, 0])
    cs = cs.at[BIAS_OFF + 1 + N_HIDDEN + 1, 0:OUTPUT_DIM].set(params['br'][0])

    # --- bf16 weight slab: one zero-padded (64, 64) band per dense layer, stacked
    #     along sublanes at tile-aligned offsets ---
    wb = jnp.zeros((WB_ROWS, PAD), f32)
    wb = wb.at[0:CONV_OUT, 0:HIDDEN_SIZE].set(params['w1'])               # hidden1
    for i in range(N_HIDDEN):
        r = (1 + i) * PAD
        wb = wb.at[r:r + HIDDEN_SIZE, 0:HIDDEN_SIZE].set(params['wh'][i])  # hidden i
    r = (1 + N_HIDDEN) * PAD
    wb = wb.at[r:r + HIDDEN_SIZE, 0:OUTPUT_DIM].set(params['wr'])          # head

    return dict(wb=wb.astype(bf16), cs=cs)


# --------------------------------- wrapper -----------------------------------
@jax.jit
def forward(x, prepared):
    b = x.shape[0]
    xf = x.reshape(b, -1).astype(jnp.float32)                     # (B, 56), one ref
    tb = b if b <= BATCH_TILE else BATCH_TILE                     # full block when small
    grid_b = pl.cdiv(b, tb)
    bp = grid_b * tb
    if bp != b:
        xf = jnp.pad(xf, ((0, bp - b), (0, 0)))

    out = pl.pallas_call(
        _forward_kernel,
        out_shape=jax.ShapeDtypeStruct((bp, OUTPUT_DIM), jnp.float32),
        grid_spec=pltpu.PrefetchScalarGridSpec(
            num_scalar_prefetch=0,
            grid=(grid_b,),
            in_specs=[
                pl.BlockSpec((tb, FEAT_IN), lambda i: (i, 0)),         # x tiled on batch
                pl.BlockSpec((WB_ROWS, PAD), lambda i: (0, 0)),        # weights resident
                pl.BlockSpec((CS_ROWS, PAD), lambda i: (0, 0)),        # consts resident
            ],
            out_specs=pl.BlockSpec((tb, OUTPUT_DIM), lambda i: (i, 0)),
        ),
        # Independent batch rows: shards across v7x's 2 TensorCores when grid_b > 1;
        # harmless (single step) at the tiny B=2 case.
        compiler_params=pltpu.CompilerParams(dimension_semantics=("parallel",)),
    )(xf, prepared['wb'], prepared['cs'])
    return out[:b]


# ------------------------------ pure-JAX reference ----------------------------
def reference(x, params):
    """Original (unfused, f32) module semantics."""
    b = x.shape[0]
    p = x[:, :, :QEST_SIZE]
    xd = x[:, :, QEST_SIZE:]
    p = jnp.einsum('bsq,qh->bsh', p, params['wq']) + params['bq'][0]
    p = p.reshape(b, 1, HIDDEN_QEST, INPUT_SIZE)
    xd = xd.reshape(b, 1, NUM_DRIVERS, INPUT_SIZE)
    img = jnp.concatenate([xd, p], axis=2)                        # (B, 1, K, ip)
    conv = jnp.einsum('bukj,ck->bcj', img, params['wc']) + params['bc'][None, :, None]
    a = jnp.tanh(conv).reshape(b, -1)                             # (B, C*ip), channel-major
    a = jnp.tanh(a @ params['w1'] + params['b1'][0])
    for i in range(N_HIDDEN):
        a = jnp.tanh(a @ params['wh'][i] + params['bh'][i, 0])
    return jnp.tanh(a @ params['wr'] + params['br'][0])


if __name__ == "__main__":
    key = jax.random.PRNGKey(0)
    k_x, k_p, k_xb = jax.random.split(key, 3)

    params = init_params(k_p)
    prepared = prepare_params(params)            # one-time; not in the per-call path

    # module-spec case: x is (B, 1, qest_size + number_of_drivers * input_size)
    x = jax.random.normal(k_x, (BATCH, 1, FEAT_IN), dtype=jnp.float32)
    out = jax.block_until_ready(forward(x, prepared))
    ref = reference(x, params)
    assert out.shape == (BATCH, OUTPUT_DIM)
    # f32 fused first layer + bf16 later MXU inputs (tanh-bounded outputs)
    assert jnp.allclose(out, ref, atol=3e-2, rtol=0.0), "mismatch vs reference (B=2)"

    # larger batch: exercises the batch grid (resident weight slabs, parallel axis)
    xb = jax.random.normal(k_xb, (256, 1, FEAT_IN), dtype=jnp.float32)
    outb = jax.block_until_ready(forward(xb, prepared))
    refb = reference(xb, params)
    assert outb.shape == (256, OUTPUT_DIM)
    assert jnp.allclose(outb, refb, atol=3e-2, rtol=0.0), "mismatch vs reference (B=256)"

    print("KERNEL_OK")
</pallas_src>

<mosaic_0001>
module attributes {stable_mosaic.version = 11 : i64} {
  func.func @_forward_kernel(%arg0: i32, %arg1: memref<2x56xf32, #tpu.memory_space<vmem>>, %arg2: memref<256x64xbf16, #tpu.memory_space<vmem>>, %arg3: memref<64x64xf32, #tpu.memory_space<vmem>>, %arg4: memref<2x8xf32, #tpu.memory_space<vmem>>) attributes {dimension_semantics = [#tpu.dimension_semantics<parallel>], iteration_bounds = array<i64: 1>, scalar_prefetch = 0 : i64, scratch_operands = 0 : i64, tpu.core_type = #tpu.core_type<tc>, window_params = [{transform_indices = @transform_0, window_bounds = array<i64: 2, 56>}, {pipeline_mode = #tpu.pipeline_mode<synchronous>, transform_indices = @transform_1, window_bounds = array<i64: 256, 64>}, {pipeline_mode = #tpu.pipeline_mode<synchronous>, transform_indices = @transform_2, window_bounds = array<i64: 64, 64>}, {transform_indices = @transform_3, window_bounds = array<i64: 2, 8>}]} {
    %c0 = arith.constant 0 : index
    %c0_0 = arith.constant 0 : index
    %0 = vector.load %arg1[%c0, %c0_0] : memref<2x56xf32, #tpu.memory_space<vmem>>, vector<2x56xf32>
    %c0_1 = arith.constant 0 : index
    %c0_2 = arith.constant 0 : index
    %1 = vector.load %arg3[%c0_1, %c0_2] : memref<64x64xf32, #tpu.memory_space<vmem>>, vector<56x64xf32>
    %cst = arith.constant dense<0.000000e+00> : vector<2x64xf32>
    %2 = tpu.matmul %0, %1, %cst {dimension_numbers = #tpu.dot_dimension_numbers<[1], [0], [0], [1], [0, 0, 1, 1], [], []>} : vector<2x56xf32>, vector<56x64xf32>, vector<2x64xf32> -> vector<2x64xf32>
    %c56 = arith.constant 56 : index
    %c0_3 = arith.constant 0 : index
    %3 = vector.load %arg3[%c56, %c0_3] : memref<64x64xf32, #tpu.memory_space<vmem>>, vector<1x64xf32>
    %4 = vector.broadcast %3 : vector<1x64xf32> to vector<2x64xf32>
    %5 = arith.addf %2, %4 : vector<2x64xf32>
    %6 = math.tanh %5 : vector<2x64xf32>
    %c0_4 = arith.constant 0 : index
    %c0_5 = arith.constant 0 : index
    %7 = vector.load %arg2[%c0_4, %c0_5] : memref<256x64xbf16, #tpu.memory_space<vmem>>, vector<64x64xbf16>
    %c57 = arith.constant 57 : index
    %c0_6 = arith.constant 0 : index
    %8 = vector.load %arg3[%c57, %c0_6] : memref<64x64xf32, #tpu.memory_space<vmem>>, vector<1x64xf32>
    %9 = arith.truncf %6 : vector<2x64xf32> to vector<2x64xbf16>
    %cst_7 = arith.constant dense<0.000000e+00> : vector<2x64xf32>
    %10 = tpu.matmul %9, %7, %cst_7 {dimension_numbers = #tpu.dot_dimension_numbers<[1], [0], [0], [1], [0, 0, 1, 1], [], []>} : vector<2x64xbf16>, vector<64x64xbf16>, vector<2x64xf32> -> vector<2x64xf32>
    %11 = vector.broadcast %8 : vector<1x64xf32> to vector<2x64xf32>
    %12 = arith.addf %10, %11 : vector<2x64xf32>
    %13 = math.tanh %12 : vector<2x64xf32>
    %c64 = arith.constant 64 : index
    %c0_8 = arith.constant 0 : index
    %14 = vector.load %arg2[%c64, %c0_8] : memref<256x64xbf16, #tpu.memory_space<vmem>>, vector<64x64xbf16>
    %c58 = arith.constant 58 : index
    %c0_9 = arith.constant 0 : index
    %15 = vector.load %arg3[%c58, %c0_9] : memref<64x64xf32, #tpu.memory_space<vmem>>, vector<1x64xf32>
    %16 = arith.truncf %13 : vector<2x64xf32> to vector<2x64xbf16>
    %cst_10 = arith.constant dense<0.000000e+00> : vector<2x64xf32>
    %17 = tpu.matmul %16, %14, %cst_10 {dimension_numbers = #tpu.dot_dimension_numbers<[1], [0], [0], [1], [0, 0, 1, 1], [], []>} : vector<2x64xbf16>, vector<64x64xbf16>, vector<2x64xf32> -> vector<2x64xf32>
    %18 = vector.broadcast %15 : vector<1x64xf32> to vector<2x64xf32>
    %19 = arith.addf %17, %18 : vector<2x64xf32>
    %20 = math.tanh %19 : vector<2x64xf32>
    %c128 = arith.constant 128 : index
    %c0_11 = arith.constant 0 : index
    %21 = vector.load %arg2[%c128, %c0_11] : memref<256x64xbf16, #tpu.memory_space<vmem>>, vector<64x64xbf16>
    %c59 = arith.constant 59 : index
    %c0_12 = arith.constant 0 : index
    %22 = vector.load %arg3[%c59, %c0_12] : memref<64x64xf32, #tpu.memory_space<vmem>>, vector<1x64xf32>
    %23 = arith.truncf %20 : vector<2x64xf32> to vector<2x64xbf16>
    %cst_13 = arith.constant dense<0.000000e+00> : vector<2x64xf32>
    %24 = tpu.matmul %23, %21, %cst_13 {dimension_numbers = #tpu.dot_dimension_numbers<[1], [0], [0], [1], [0, 0, 1, 1], [], []>} : vector<2x64xbf16>, vector<64x64xbf16>, vector<2x64xf32> -> vector<2x64xf32>
    %25 = vector.broadcast %22 : vector<1x64xf32> to vector<2x64xf32>
    %26 = arith.addf %24, %25 : vector<2x64xf32>
    %27 = math.tanh %26 : vector<2x64xf32>
    %c192 = arith.constant 192 : index
    %c0_14 = arith.constant 0 : index
    %28 = vector.load %arg2[%c192, %c0_14] : memref<256x64xbf16, #tpu.memory_space<vmem>>, vector<64x64xbf16>
    %c60 = arith.constant 60 : index
    %c0_15 = arith.constant 0 : index
    %29 = vector.load %arg3[%c60, %c0_15] : memref<64x64xf32, #tpu.memory_space<vmem>>, vector<1x64xf32>
    %30 = arith.truncf %27 : vector<2x64xf32> to vector<2x64xbf16>
    %cst_16 = arith.constant dense<0.000000e+00> : vector<2x64xf32>
    %31 = tpu.matmul %30, %28, %cst_16 {dimension_numbers = #tpu.dot_dimension_numbers<[1], [0], [0], [1], [0, 0, 1, 1], [], []>} : vector<2x64xbf16>, vector<64x64xbf16>, vector<2x64xf32> -> vector<2x64xf32>
    %32 = vector.broadcast %29 : vector<1x64xf32> to vector<2x64xf32>
    %33 = arith.addf %31, %32 : vector<2x64xf32>
    %34 = math.tanh %33 : vector<2x64xf32>
    %35 = vector.extract_strided_slice %34 {offsets = [0, 0], sizes = [2, 8], strides = [1, 1]} : vector<2x64xf32> to vector<2x8xf32>
    %c0_17 = arith.constant 0 : index
    %c0_18 = arith.constant 0 : index
    %36 = vector.load %arg4[%c0_17, %c0_18] : memref<2x8xf32, #tpu.memory_space<vmem>>, vector<2x8xf32>
    tpu.vector_store %arg4[%c0_17, %c0_18], %35 {strides = array<i32>} : memref<2x8xf32, #tpu.memory_space<vmem>>, vector<2x8xf32>,
    return
  }
  func.func @transform_0(%arg0: i32) -> (i32, i32) {
    %c0_i32 = arith.constant 0 : i32
    %c0_i32_0 = arith.constant 0 : i32
    return %arg0, %c0_i32 : i32, i32
  }
  func.func @transform_1(%arg0: i32) -> (i32, i32) {
    %c0_i32 = arith.constant 0 : i32
    %c0_i32_0 = arith.constant 0 : i32
    %c0_i32_1 = arith.constant 0 : i32
    return %c0_i32, %c0_i32_0 : i32, i32
  }
  func.func @transform_2(%arg0: i32) -> (i32, i32) {
    %c0_i32 = arith.constant 0 : i32
    %c0_i32_0 = arith.constant 0 : i32
    %c0_i32_1 = arith.constant 0 : i32
    return %c0_i32, %c0_i32_0 : i32, i32
  }
  func.func @transform_3(%arg0: i32) -> (i32, i32) {
    %c0_i32 = arith.constant 0 : i32
    %c0_i32_0 = arith.constant 0 : i32
    return %arg0, %c0_i32 : i32, i32
  }
}

</mosaic_0001>

<bundles_post_ra>
// kernel: forward.1
= control target key start
LH: loop header
LB: loop body
LE: loop exit
PB: predicated region body
PF: predicated region fallthrough
CT: control target
= control target key end

     0   :  { %v619_v1 = vmov 0.0   ;;  %vm620_vm0 = vmmov 0   ;;  %vm29_vm1 = vcmask 457728   ;;  %s770_s0 = inlined_call_operand.vmem [shape: f32[2,56], index: 0, kind: input, shape index: {}]   ;;  %s771_s1 = inlined_call_operand.vmem [shape: bf16[256,64], index: 1, kind: input, shape index: {}]   ;;  %s772_s2 = inlined_call_operand.vmem [shape: f32[64,64], index: 2, kind: input, shape index: {}]   ;;  %s773_s3 = inlined_call_operand.hbm [shape: f32[2,8], index: 3, kind: output, shape index: {}]  }
   0x1   :  { %v23_v0 = vld [vmem:[%s772_s2 + $0x30] sm:$0xff]  ;;  %503 = vmatprep.subr.mxu0 %v619_v1  ;;  %v22_v2 = vld [vmem:[%s772_s2 + $0x28] sm:$0xff]  ;;  %517 = vmatprep.mubr.msk.f32.mxu0 %vm620_vm0, %v619_v1  ;;  %v21_v3 = vld [vmem:[%s772_s2 + $0x20] sm:$0xff] }
   0x2   :  { %504 = vmatpush3.msra.mxu0 %v23_v0  ;;  %520 = vmatprep.subr.bf16.mxu1 %v619_v1  ;;  %v20_v4 = vld [vmem:[%s772_s2 + $0x18] sm:$0xff]  ;;  %v19_v5 = vld [vmem:[%s772_s2 + $0x10] sm:$0xff]  ;;  %v18_v6 = vld [vmem:[%s772_s2 + $0x8] sm:$0xff] }
   0x3   :  { %505 = vmatprep.subr.mxu0 %v619_v1  ;;  %528 = vmatprep.mubr.msk.bf16.mxu1 %vm620_vm0, %v619_v1  ;;  %v17_v7 = vld [vmem:[%s772_s2] sm:$0xff] }
   0x4   :  { %506 = vmatpush3.msra.mxu0 %v22_v2  ;;  %v16_v8 = vld [vmem:[%s770_s0] sm:$0x3] }
   0x5   :  { %507 = vmatprep.subr.mxu0 %v619_v1 }
   0x6   :  { %508 = vmatpush3.msra.mxu0 %v21_v3 }
   0x7   :  { %509 = vmatprep.subr.mxu0 %v619_v1 }
   0x8   :  { %510 = vmatpush3.msra.mxu0 %v20_v4 }
   0x9   :  { %511 = vmatprep.subr.mxu0 %v619_v1 }
   0xa   :  { %512 = vmatpush3.msra.mxu0 %v19_v5 }
   0xb   :  { %513 = vmatprep.subr.mxu0 %v619_v1 }
   0xc   :  { %514 = vmatpush3.msra.mxu0 %v18_v6 }
   0xd   :  { %515 = vmatprep.subr.mxu0 %v619_v1 }
   0xe   :  { %8 = vsyncpa [#allocation3], 0  ;;  %516 = vmatpush3.msra.mxu0 %v17_v7  ;;  %v571_v9 = vld [vmem:[%s771_s1 + $0x18] sm:$0xff]   ;;  %v572_v10 = vld [vmem:[%s771_s1 + $0x10] sm:$0xff]   ;;  %vm142_vm2 = vcmask 523264   ;;  %vm433_vm3 = vcmask 58368  }
   0xf   :  { %518 = vmatmul.mubr.msk.f32.vlgmr.msra.gmra.mxu0 %vm29_vm1, %v16_v8  ;;  %532 = vmatprep.subr.bf16.mxu0 %v619_v1  ;;  %v573_v11 = vld [vmem:[%s771_s1 + $0x8] sm:$0xff]   ;;  %v574_v12 = vld [vmem:[%s771_s1] sm:$0xff]   ;;  %v449_v13 = vld [vmem:[%s772_s2 + $0x38] ss:$0 sm:$0xff] }
  0x10   :  { %540 = vmatprep.mubr.msk.bf16.mxu0 %vm620_vm0, %v619_v1  ;;  %521 = vmatpush3.bf16.msra.mxu1 %v571_v9  ;;  %v575_v19 = vld [vmem:[%s771_s1 + $0x38] sm:$0xff]   ;;  %v576_v20 = vld [vmem:[%s771_s1 + $0x30] sm:$0xff]   ;;  %v577_v21 = vld [vmem:[%s771_s1 + $0x28] sm:$0xff]  }
  0x11   :  { %522 = vmatprep.subr.bf16.mxu1 %v619_v1  ;;  %533 = vmatpush3.bf16.msra.mxu0 %v575_v19  ;;  %v578_v22 = vld [vmem:[%s771_s1 + $0x20] sm:$0xff]   ;;  %v451_v23 = vld [vmem:[%s772_s2 + $0x39] ss:$0 sm:$0xff]  ;;  %v580_v32 = vld [vmem:[%s771_s1 + $0x50] sm:$0xff]  }
  0x12   :  { %534 = vmatprep.subr.bf16.mxu0 %v619_v1  ;;  %v579_v31 = vld [vmem:[%s771_s1 + $0x58] sm:$0xff]   ;;  %v581_v33 = vld [vmem:[%s771_s1 + $0x48] sm:$0xff]   ;;  %v582_v34 = vld [vmem:[%s771_s1 + $0x40] sm:$0xff]  }
  0x13   :  { %v457_v35 = vld [vmem:[%s772_s2 + $0x3a] ss:$0 sm:$0xff]  ;;  %v584_v44 = vld [vmem:[%s771_s1 + $0x70] sm:$0xff]   ;;  %v585_v45 = vld [vmem:[%s771_s1 + $0x68] sm:$0xff]  }
  0x14   :  { %523 = vmatpush3.bf16.msra.mxu1 %v572_v10  ;;  %v583_v43 = vld [vmem:[%s771_s1 + $0x78] sm:$0xff]   ;;  %v586_v46 = vld [vmem:[%s771_s1 + $0x60] sm:$0xff]   ;;  %s621_s1 = smov [#allocation2]  }
  0x15   :  { %524 = vmatprep.subr.bf16.mxu1 %v619_v1  ;;  %535 = vmatpush3.bf16.msra.mxu0 %v576_v20  ;;  %v463_v47 = vld [vmem:[%s772_s2 + $0x3b] ss:$0 sm:$0xff]  ;;  %v469_v55 = vld [vmem:[%s772_s2 + $0x3c] ss:$0 sm:$0xff]  ;;  %s441_s14 = sshll.u32 %s621_s1, 4  ;;  %s442_s14 = int_to_ptr.vmem [resolvable:$true] %s441_s14 }
  0x16   :  { %536 = vmatprep.subr.bf16.mxu0 %v619_v1  ;;  %s597_s15 = scalar_lea.vmem %s442_s14, 32  ;;  %p602_p1 = scmp.lt.s32.totalorder %s442_s14, %s442_s14 }
  0x17   :  { %p598_p0 = scmp.ne.s32.totalorder %s442_s14, %s597_s15  ;;  %p603_p2 = scmp.lt.s32.totalorder %s597_s15, %s597_s15 }
  0x18   :  { %525 = vmatpush3.bf16.msra.mxu1 %v573_v11 }
  0x19   :  { %526 = vmatprep.subr.bf16.mxu1 %v619_v1  ;;  %537 = vmatpush3.bf16.msra.mxu0 %v577_v21  ;;  %p604_p3 = por %p603_p2, %p602_p1 }
  0x1a   :  { %538 = vmatprep.subr.bf16.mxu0 %v619_v1 }
  0x1b   :  { %p605_p4 = pnand %p604_p3, %p598_p0 }
  0x1c   :  { %527 = vmatpush3.bf16.msra.mxu1 %v574_v12 }
  0x1d   :  { %544 = vmatprep.subr.bf16.mxu1 %v619_v1  ;;  %539 = vmatpush3.bf16.msra.mxu0 %v578_v22 }
  0x1e   :  { %556 = vmatprep.subr.bf16.mxu0 %v619_v1 }
  0xcf   :  { %v99_v14 = vpop.f32.mrf.mxu0 }
  0xd0   :  { %v100_v15 = vadd.f32 %v449_v13, %v99_v14 }
  0xd1   :  { %v519_v16 = vpop.f32.mrf.mxu0 }
  0xd2   :  { %587 = vtanh.f32 %v100_v15 }
  0xdf   :  { %v588_v17 = vpop.eup %587 }
  0xe0   :  { %v113_v18 = vpack.c.bf16 %v588_v17, %v588_v17 }
  0xe2   :  { %529 = vmatmul.mubr.msk.bf16.vlgmr.msra.gmra.mxu1 %vm142_vm2, %v113_v18 }
  0xe3   :  { %552 = vmatprep.mubr.msk.bf16.mxu1 %vm620_vm0, %v619_v1  ;;  %545 = vmatpush3.bf16.msra.mxu1 %v579_v31 }
  0xe4   :  { %546 = vmatprep.subr.bf16.mxu1 %v619_v1 }
  0xe7   :  { %547 = vmatpush3.bf16.msra.mxu1 %v580_v32 }
  0xe8   :  { %548 = vmatprep.subr.bf16.mxu1 %v619_v1 }
  0xeb   :  { %549 = vmatpush3.bf16.msra.mxu1 %v581_v33 }
  0xec   :  { %550 = vmatprep.subr.bf16.mxu1 %v619_v1 }
  0xef   :  { %551 = vmatpush3.bf16.msra.mxu1 %v582_v34 }
 0x1a2   :  { %v180_v24 = vpop.f32.mrf.mxu1 }
 0x1a3   :  { %v181_v25 = vadd.f32 %v451_v23, %v180_v24 }
 0x1a4   :  { %v530_v26 = vpop.f32.mrf.mxu1 }
 0x1a5   :  { %589 = vtanh.f32 %v181_v25 }
 0x1a6   :  { %v183_v27 = vpop.f32.mrf.mxu1 }
 0x1a8   :  { %v531_v28 = vpop.f32.mrf.mxu1 }
 0x1b2   :  { %v590_v29 = vpop.eup %589 }
 0x1b3   :  { %v196_v30 = vpack.c.bf16 %v590_v29, %v590_v29 }
 0x1b5   :  { %541 = vmatmul.mubr.msk.bf16.vlgmr.msra.gmra.mxu0 %vm142_vm2, %v196_v30 }
 0x1b6   :  { %564 = vmatprep.mubr.msk.bf16.mxu0 %vm620_vm0, %v619_v1  ;;  %557 = vmatpush3.bf16.msra.mxu0 %v583_v43 }
 0x1b7   :  { %558 = vmatprep.subr.bf16.mxu0 %v619_v1 }
 0x1ba   :  { %559 = vmatpush3.bf16.msra.mxu0 %v584_v44 }
 0x1bb   :  { %560 = vmatprep.subr.bf16.mxu0 %v619_v1 }
 0x1be   :  { %561 = vmatpush3.bf16.msra.mxu0 %v585_v45 }
 0x1bf   :  { %562 = vmatprep.subr.bf16.mxu0 %v619_v1 }
 0x1c2   :  { %563 = vmatpush3.bf16.msra.mxu0 %v586_v46 }
 0x275   :  { %v262_v36 = vpop.f32.mrf.mxu0 }
 0x276   :  { %v263_v37 = vadd.f32 %v457_v35, %v262_v36 }
 0x277   :  { %v542_v38 = vpop.f32.mrf.mxu0 }
 0x278   :  { %591 = vtanh.f32 %v263_v37 }
 0x279   :  { %v265_v39 = vpop.f32.mrf.mxu0 }
 0x27b   :  { %v543_v40 = vpop.f32.mrf.mxu0 }
 0x285   :  { %v592_v41 = vpop.eup %591 }
 0x286   :  { %v278_v42 = vpack.c.bf16 %v592_v41, %v592_v41 }
 0x288   :  { %553 = vmatmul.mubr.msk.bf16.vlgmr.msra.gmra.mxu1 %vm142_vm2, %v278_v42 }
 0x348   :  { %v344_v48 = vpop.f32.mrf.mxu1 }
 0x349   :  { %v345_v49 = vadd.f32 %v463_v47, %v344_v48 }
 0x34a   :  { %v554_v50 = vpop.f32.mrf.mxu1 }
 0x34b   :  { %593 = vtanh.f32 %v345_v49 }
 0x34c   :  { %v347_v51 = vpop.f32.mrf.mxu1 }
 0x34e   :  { %v555_v52 = vpop.f32.mrf.mxu1 }
 0x358   :  { %v594_v53 = vpop.eup %593 }
 0x359   :  { %v360_v54 = vpack.c.bf16 %v594_v53, %v594_v53 }
 0x35b   :  { %565 = vmatmul.mubr.msk.bf16.vlgmr.msra.gmra.mxu0 %vm142_vm2, %v360_v54 }
 0x41b   :  { %v426_v56 = vpop.f32.mrf.mxu0 }
 0x41c   :  { %v427_v57 = vadd.f32 %v469_v55, %v426_v56 }
 0x41d   :  { %v566_v58 = vpop.f32.mrf.mxu0 }
 0x41e   :  { %595 = vtanh.f32 %v427_v57 }
 0x41f   :  { %v429_v59 = vpop.f32.mrf.mxu0 }
 0x421   :  { %v567_v60 = vpop.f32.mrf.mxu0 }
 0x42b   :  { %v596_v61 = vpop.eup %595 }
 0x42c   :  { %434 = vst.msk [vmem:[#allocation2] sm:$0x3] %vm433_vm3, %v596_v61 }
 0x42d   :  { %608 = shalt.err (!%p605_p4)
}
 0x42e   :  { %444 = dma.vmem_to_hbm [thread:$0]  %s442_s14, 32, %s773_s3, [#allocation3]  }
 0x42f   :  { %617 = dma.done.wait [#allocation3], 32  }
 0x430   :  { %618 = vsyncadd [#allocation3], 4294967264 }
 0x431   :  { %448 = vsyncpa [#allocation3], 1 }

</bundles_post_ra>
